<compile_context>
chip_gen: v6e
topology: v6e:2x2x1
jax: 0.10.0
libtpu: 0.0.40
codegen_flags: <defaults>
</compile_context>

<pallas_src>
import jax
import jax.numpy as jnp
from jax import lax
from jax.experimental import pallas as pl
from jax.experimental.pallas import tpu as pltpu


def _round_up(x, m):
    return (x + m - 1) // m * m


# ----------------------------- Pallas kernels ------------------------------

def _stats_kernel(p_ref, w_ref, stats_ref):
    # Stats-only pass: conv-as-matmul on the MXU (f32 accumulation), keep only
    # per-tile partial BatchNorm statistics (row 0 = sum, row 1 = sum of
    # squares, per output channel).  y is never written to HBM.
    y = jnp.dot(p_ref[...], w_ref[...], preferred_element_type=jnp.float32)
    s = jnp.sum(y, axis=0)[None, :]
    sq = jnp.sum(y * y, axis=0)[None, :]
    stats_ref[...] = jnp.concatenate([s, sq], axis=0)


def _matmul_bn_kernel(p_ref, w_ref, scale_ref, shift_ref, o_ref):
    # Fused conv matmul + BatchNorm apply: o = y * scale + shift.
    y = jnp.dot(p_ref[...], w_ref[...], preferred_element_type=jnp.float32)
    o_ref[...] = (y * scale_ref[...] + shift_ref[...]).astype(o_ref.dtype)


def _matmul_stats_kernel(p_ref, w_ref, y_ref, stats_ref):
    # Materialize-y variant (large K): matmul + per-tile partial stats.
    # Stats come from the in-kernel f32 accumulator; y is stored narrow.
    y = jnp.dot(p_ref[...], w_ref[...], preferred_element_type=jnp.float32)
    y_ref[...] = y.astype(y_ref.dtype)
    s = jnp.sum(y, axis=0)[None, :]
    sq = jnp.sum(y * y, axis=0)[None, :]
    stats_ref[...] = jnp.concatenate([s, sq], axis=0)


def _matmul_kernel(p_ref, w_ref, o_ref):
    # normalize=False: plain conv matmul.
    o_ref[...] = jnp.dot(p_ref[...], w_ref[...],
                         preferred_element_type=jnp.float32).astype(o_ref.dtype)


# -------------------------------- wrapper -----------------------------------

def down_conv(x, weight, gamma=None, beta=None, *, normalize=True, eps=1e-5,
              neg_slope=0.2, tm=None, compute_dtype=jnp.bfloat16,
              materialize_y=None, vmem_budget_bytes=24 * 1024 * 1024):
    """x: [N, Cin, H, W] (NCHW). weight: [Cout, Cin, 4, 4]. Returns NCHW."""
    N, Cin, H, W = x.shape
    Cout, Cin2, KH, KW = weight.shape
    assert Cin2 == Cin and (KH, KW) == (4, 4)
    assert H % 2 == 0 and W % 2 == 0
    Ho, Wo = H // 2, W // 2
    M = N * Ho * Wo
    K = Cin * KH * KW

    cd_bytes = jnp.dtype(compute_dtype).itemsize
    out_dtype = x.dtype
    out_bytes = jnp.dtype(out_dtype).itemsize

    # LeakyReLU once on the raw input; NCHW -> NHWC is a 1x-size transpose
    # (fused with the activation by XLA), then replicate ('edge') pad H, W.
    xr = jnp.where(x >= 0, x, neg_slope * x).astype(compute_dtype)
    x_nhwc = jnp.transpose(xr, (0, 2, 3, 1))
    xp = jnp.pad(x_nhwc, ((0, 0), (1, 1), (1, 1), (0, 0)), mode="edge")

    # im2col with NO transpose of the 4x-expanded tensor: 16 strided NHWC
    # slices concatenated along the channel axis.  K ordering = (kh, kw, Cin).
    cols = [xp[:, kh:kh + 2 * Ho:2, kw:kw + 2 * Wo:2, :]
            for kh in range(KH) for kw in range(KW)]
    patches = jnp.concatenate(cols, axis=-1).reshape(M, K)

    # Weight flattened in matching (kh, kw, Cin) order -> [K, Cout], padded to
    # lane-dense Cp (zero columns sliced off / ignored downstream).
    Cp = _round_up(Cout, 128)
    w2 = jnp.transpose(weight, (2, 3, 1, 0)).reshape(K, Cout).astype(compute_dtype)
    w2 = jnp.pad(w2, ((0, 0), (0, Cp - Cout)))

    # Strategy: recompute the matmul in the apply pass (patches read twice,
    # y never written) when re-reading patches is cheaper than a narrow
    # (compute_dtype) y round trip; otherwise materialize y once.
    if materialize_y is None:
        materialize_y = (K * cd_bytes) > (2 * 2 * Cp)

    # Tile rows from a VMEM budget: double-buffered patches + widest output
    # tile, plus the resident weight tile.  Clamp so n_tiles >= 2 when M
    # allows it (v7x megacore sharding of the "parallel" axis).
    resident = K * Cp * cd_bytes
    per_row = 2 * (K * cd_bytes + Cp * max(out_bytes, cd_bytes))
    avail = max(vmem_budget_bytes - resident, 8 * per_row)
    tm_auto = max(8, min(4096, avail // per_row))
    if tm is None:
        tm = tm_auto
    cap = _round_up(max((M + 1) // 2, 8), 8)
    tm_eff = max(8, (min(tm, cap) // 8) * 8)

    Mp = _round_up(M, tm_eff)
    n_tiles = Mp // tm_eff
    if Mp != M:
        # Zero rows contribute nothing to sum / sum-of-squares; stats divide
        # by the true M below, and padded output rows are sliced off.
        patches = jnp.pad(patches, ((0, Mp - M), (0, 0)))

    cparams = pltpu.CompilerParams(
        dimension_semantics=("parallel",),
        vmem_limit_bytes=min(2 * vmem_budget_bytes, 64 * 1024 * 1024),
    )
    p_spec = pl.BlockSpec((tm_eff, K), lambda i: (i, 0))
    w_spec = pl.BlockSpec((K, Cp), lambda i: (0, 0))
    # TODO(synk): for very deep layers (K*Cp weights alone near the VMEM
    # budget) add an inner "arbitrary" K grid axis with an f32 accumulator.

    if not normalize:
        out = pl.pallas_call(
            _matmul_kernel,
            out_shape=jax.ShapeDtypeStruct((Mp, Cp), out_dtype),
            grid=(n_tiles,),
            in_specs=[p_spec, w_spec],
            out_specs=pl.BlockSpec((tm_eff, Cp), lambda i: (i, 0)),
            compiler_params=cparams,
        )(patches, w2)
        out = out[:M, :Cout]
        return out.reshape(N, Ho, Wo, Cout).transpose(0, 3, 1, 2).astype(x.dtype)

    if materialize_y:
        # Single Pallas pass: matmul + per-tile stats; y stored in compute_dtype.
        y, stats = pl.pallas_call(
            _matmul_stats_kernel,
            out_shape=(jax.ShapeDtypeStruct((Mp, Cp), compute_dtype),
                       jax.ShapeDtypeStruct((n_tiles, 2, Cp), jnp.float32)),
            grid=(n_tiles,),
            in_specs=[p_spec, w_spec],
            out_specs=(pl.BlockSpec((tm_eff, Cp), lambda i: (i, 0)),
                       pl.BlockSpec((None, 2, Cp), lambda i: (i, 0, 0))),
            compiler_params=cparams,
        )(patches, w2)
    else:
        # Pass 1: stats only (the Mp x Cp intermediate never touches HBM).
        stats = pl.pallas_call(
            _stats_kernel,
            out_shape=jax.ShapeDtypeStruct((n_tiles, 2, Cp), jnp.float32),
            grid=(n_tiles,),
            in_specs=[p_spec, w_spec],
            out_specs=pl.BlockSpec((None, 2, Cp), lambda i: (i, 0, 0)),
            compiler_params=cparams,
        )(patches, w2)

    # Reduce tiny (n_tiles, 2, Cp) partials and build training-mode BN
    # scale/shift.
    s = jnp.sum(stats[:, 0, :], axis=0)
    sq = jnp.sum(stats[:, 1, :], axis=0)
    mean = s / M
    # TODO(synk): E[x^2]-E[x]^2 in f32 can cancel for very large M / strongly
    # offset activations; switch to per-tile (mean, M2) + Chan combine then.
    var = jnp.maximum(sq / M - mean * mean, 0.0)          # biased (training)
    gamma_p = jnp.pad(gamma.astype(jnp.float32), (0, Cp - Cout))
    beta_p = jnp.pad(beta.astype(jnp.float32), (0, Cp - Cout))
    scale = gamma_p * lax.rsqrt(var + eps)
    shift = beta_p - mean * scale

    if materialize_y:
        # BN apply is left to XLA so it fuses with the slice + NHWC->NCHW
        # transpose: one pass over the output, no separate Pallas apply.
        yv = y[:M, :Cout].astype(jnp.float32)
        out = yv * scale[:Cout] + shift[:Cout]
        return out.reshape(N, Ho, Wo, Cout).transpose(0, 3, 1, 2).astype(x.dtype)

    # Pass 2: recompute the conv matmul and apply BN in one fused kernel.
    out = pl.pallas_call(
        _matmul_bn_kernel,
        out_shape=jax.ShapeDtypeStruct((Mp, Cp), out_dtype),
        grid=(n_tiles,),
        in_specs=[p_spec, w_spec,
                  pl.BlockSpec((1, Cp), lambda i: (0, 0)),
                  pl.BlockSpec((1, Cp), lambda i: (0, 0))],
        out_specs=pl.BlockSpec((tm_eff, Cp), lambda i: (i, 0)),
        compiler_params=cparams,
    )(patches, w2, scale[None, :], shift[None, :])
    out = out[:M, :Cout]
    # TODO(synk): emit NCHW directly from the apply kernel (in-tile transpose
    # when tm | Ho*Wo) to remove this trailing layout pass.
    return out.reshape(N, Ho, Wo, Cout).transpose(0, 3, 1, 2).astype(x.dtype)


# ------------------------------- reference ----------------------------------

def _reference(x, weight, gamma, beta, *, normalize=True, eps=1e-5,
               neg_slope=0.2):
    """Pure-JAX reference matching the PyTorch module (training-mode BN)."""
    xr = jnp.where(x >= 0, x, neg_slope * x)
    xr = jnp.pad(xr, ((0, 0), (0, 0), (1, 1), (1, 1)), mode="edge")
    y = lax.conv_general_dilated(
        xr, weight, window_strides=(2, 2), padding="VALID",
        dimension_numbers=("NCHW", "OIHW", "NCHW"))
    if normalize:
        mean = jnp.mean(y, axis=(0, 2, 3), keepdims=True)
        var = jnp.mean(jnp.square(y - mean), axis=(0, 2, 3), keepdims=True)
        y = (y - mean) * lax.rsqrt(var + eps)
        y = y * gamma.reshape(1, -1, 1, 1) + beta.reshape(1, -1, 1, 1)
    return y


if __name__ == "__main__":
    key = jax.random.PRNGKey(0)
    kx, kw, kx2 = jax.random.split(key, 3)

    N, Cin, Cout = 2, 4, 8
    weight = jax.random.normal(kw, (Cout, Cin, 4, 4), dtype=jnp.float32) * 0.1
    gamma = jnp.ones((Cout,), dtype=jnp.float32)
    beta = jnp.zeros((Cout,), dtype=jnp.float32)

    # Case 1: f32 MXU path, recompute scheme, auto tiling (tight tolerance).
    x = jax.random.normal(kx, (N, Cin, 16, 16), dtype=jnp.float32)
    out = jax.block_until_ready(
        down_conv(x, weight, gamma, beta, normalize=True,
                  compute_dtype=jnp.float32))
    ref = _reference(x, weight, gamma, beta, normalize=True)
    assert out.shape == (N, Cout, 8, 8)
    assert jnp.allclose(out, ref, atol=1e-4, rtol=1e-4)

    # Case 2: bf16 MXU path, recompute scheme (relaxed tolerance).
    out_bf = jax.block_until_ready(
        down_conv(x, weight, gamma, beta, normalize=True,
                  compute_dtype=jnp.bfloat16))
    assert jnp.allclose(out_bf, ref, atol=5e-2, rtol=5e-2)

    # Case 3: multi-tile M grid (M=512, tm=128 -> 4 tiles), bf16, stats split
    # across tiles.
    x2 = jax.random.normal(kx2, (N, Cin, 32, 32), dtype=jnp.float32)
    out2 = jax.block_until_ready(
        down_conv(x2, weight, gamma, beta, normalize=True, tm=128,
                  compute_dtype=jnp.bfloat16))
    ref2 = _reference(x2, weight, gamma, beta, normalize=True)
    assert out2.shape == (N, Cout, 16, 16)
    assert jnp.allclose(out2, ref2, atol=5e-2, rtol=5e-2)

    # Case 4: forced materialize-y path (deep-layer scheme), bf16.
    out3 = jax.block_until_ready(
        down_conv(x2, weight, gamma, beta, normalize=True, tm=128,
                  compute_dtype=jnp.bfloat16, materialize_y=True))
    assert jnp.allclose(out3, ref2, atol=5e-2, rtol=5e-2)

    # Case 5: normalize=False branch.
    out4 = jax.block_until_ready(
        down_conv(x, weight, gamma, beta, normalize=False,
                  compute_dtype=jnp.bfloat16))
    ref4 = _reference(x, weight, gamma, beta, normalize=False)
    assert jnp.allclose(out4, ref4, atol=5e-2, rtol=5e-2)

    print("KERNEL_OK")
</pallas_src>

<mosaic_0001>
module attributes {stable_mosaic.version = 11 : i64} {
  func.func @_stats_kernel(%arg0: i32, %arg1: memref<64x64xf32, #tpu.memory_space<vmem>>, %arg2: memref<64x128xf32, #tpu.memory_space<vmem>>, %arg3: memref<1x2x128xf32, #tpu.memory_space<vmem>>) attributes {dimension_semantics = [#tpu.dimension_semantics<parallel>], iteration_bounds = array<i64: 2>, scalar_prefetch = 0 : i64, scratch_operands = 0 : i64, tpu.core_type = #tpu.core_type<tc>, window_params = [{transform_indices = @transform_0, window_bounds = array<i64: 64, 64>}, {pipeline_mode = #tpu.pipeline_mode<synchronous>, transform_indices = @transform_1, window_bounds = array<i64: 64, 128>}, {transform_indices = @transform_2, window_bounds = array<i64: 1, 2, 128>}]} {
    %c0 = arith.constant 0 : index
    %c0_0 = arith.constant 0 : index
    %0 = vector.load %arg1[%c0, %c0_0] : memref<64x64xf32, #tpu.memory_space<vmem>>, vector<64x64xf32>
    %c0_1 = arith.constant 0 : index
    %c0_2 = arith.constant 0 : index
    %1 = vector.load %arg2[%c0_1, %c0_2] : memref<64x128xf32, #tpu.memory_space<vmem>>, vector<64x128xf32>
    %cst = arith.constant dense<0.000000e+00> : vector<64x128xf32>
    %2 = tpu.matmul %0, %1, %cst {dimension_numbers = #tpu.dot_dimension_numbers<[1], [0], [0], [1], [0, 0, 1, 1], [], []>} : vector<64x64xf32>, vector<64x128xf32>, vector<64x128xf32> -> vector<64x128xf32>
    %cst_3 = arith.constant dense<0.000000e+00> : vector<128xf32>
    %3 = vector.multi_reduction <add>, %2, %cst_3 [0] : vector<64x128xf32> to vector<128xf32>
    %4 = vector.shape_cast %3 : vector<128xf32> to vector<1x128xf32>
    %5 = arith.mulf %2, %2 : vector<64x128xf32>
    %cst_4 = arith.constant dense<0.000000e+00> : vector<128xf32>
    %6 = vector.multi_reduction <add>, %5, %cst_4 [0] : vector<64x128xf32> to vector<128xf32>
    %7 = vector.shape_cast %6 : vector<128xf32> to vector<1x128xf32>
    %8 = tpu.concatenate %4, %7 in 0 : vector<1x128xf32>, vector<1x128xf32> -> vector<2x128xf32>
    %c0_5 = arith.constant 0 : index
    %c0_6 = arith.constant 0 : index
    %c0_7 = arith.constant 0 : index
    %9 = vector.load %arg3[%c0_5, %c0_6, %c0_7] : memref<1x2x128xf32, #tpu.memory_space<vmem>>, vector<1x2x128xf32>
    %10 = vector.shape_cast %9 : vector<1x2x128xf32> to vector<2x128xf32>
    %11 = vector.shape_cast %8 : vector<2x128xf32> to vector<1x2x128xf32>
    tpu.vector_store %arg3[%c0_5, %c0_6, %c0_7], %11 {strides = array<i32>} : memref<1x2x128xf32, #tpu.memory_space<vmem>>, vector<1x2x128xf32>,
    return
  }
  func.func @transform_0(%arg0: i32) -> (i32, i32) {
    %c0_i32 = arith.constant 0 : i32
    %c0_i32_0 = arith.constant 0 : i32
    return %arg0, %c0_i32 : i32, i32
  }
  func.func @transform_1(%arg0: i32) -> (i32, i32) {
    %c0_i32 = arith.constant 0 : i32
    %c0_i32_0 = arith.constant 0 : i32
    %c0_i32_1 = arith.constant 0 : i32
    return %c0_i32, %c0_i32_0 : i32, i32
  }
  func.func @transform_2(%arg0: i32) -> (i32, i32, i32) {
    %c0_i32 = arith.constant 0 : i32
    %c0_i32_0 = arith.constant 0 : i32
    %c0_i32_1 = arith.constant 0 : i32
    return %arg0, %c0_i32, %c0_i32_0 : i32, i32, i32
  }
}

</mosaic_0001>

<bundles_post_ra>
// kernel: tpu_custom_call.1
= control target key start
LH: loop header
LB: loop body
LE: loop exit
PB: predicated region body
PF: predicated region fallthrough
CT: control target
= control target key end

     0   :  { %7 = vsyncpa [#allocation3], 0  ;;  %s730_s0 = inlined_call_operand.vmem [shape: f32[128,64], index: 0, kind: input, shape index: {}]   ;;  %s731_s1 = inlined_call_operand.vmem [shape: f32[64,128], index: 1, kind: input, shape index: {}]   ;;  %s732_s2 = inlined_call_operand.hbm [shape: f32[2,2,128], index: 2, kind: output, shape index: {}]  }
   0x1   :  { %9 = vsyncpa [#allocation3 + $0x1], 0  ;;  %s596_s9 = smov 0   ;;  %s598_s10 = smov 0  }
   0x2   :  { %s600_s11 = smov 0   ;;  %s602_s12 = smov 0  }
   0x3 LB: > { %s617_s13 = sadd.s32 4294967295, %s578_s12   ;;  %s400_s14 = sadd.s32 4294967294, %s578_s12   ;;  %s578_s12 = sphi %s602_s12, %s738_s12   ;;  %s574_s11 = sphi %s600_s11, %s737_s11   ;;  %s570_s10 = sphi %s598_s10, %s736_s10   ;;  %s566_s9 = sphi %s596_s9, %s735_s9  }
   0x4   : > { %s621_s15 = sadd.s32 1, %s578_s12   ;;  %s69_s16 = sadd.s32 1, %s574_s11 }
   0x5   : > { %s66_s17 = ssub.s32 %s578_s12, %s621_s15  ;;  %p79_p0 = scmp.ne.s32.totalorder %s574_s11, %s570_s10 }
   0x6   : > { %p67_p1 = scmp.eq.s32.totalorder %s66_s17, 0  ;;  %p80_p2 = scmp.eq.s32.totalorder %s617_s13, 1 }
   0x7   : > { %p85_p3 = scmp.ne.s32.totalorder %s570_s10, %s566_s9  ;;  %p86_p4 = scmp.eq.s32.totalorder %s400_s14, 1 }
   0x8   : > { %s632_s18 = scalar_select %p67_p1, %s574_s11, %s69_s16  }
   0x9   : > { %p634_p5 = por %p80_p2, %p79_p0  ;;  %p638_p6 = por %p86_p4, %p85_p3 }
   0xa   : > { %p403_p7 = scmp.ge.s32.totalorder %s578_s12, 1  ;;  %p116_p8 = scmp.lt.s32.totalorder %s578_s12, 3 }
   0xc   : > { %p117_p9 = pnand %p403_p7, %p116_p8 }
   0xd   : > { %s405_s25 = sshll.u32 (!%p117_p9), %s617_s13, 3  ;;  %s135_s23 = sand.u32 (!%p117_p9), 1, %s570_s10  }
   0xe   : > { %120 = sbr.rel (%p117_p9) target bundleno = 275 (0x113), region = 28  ;;  %p139_p10 = scmp.lt.s32.totalorder (!%p117_p9), %s405_s25, 15 }
   0xf   : > { %s404_s24 = sshll.u32 (!%p117_p9), %s135_s23, 1  ;;  %s328_s3 = scalar_lea.sflag (!%p117_p9), [#allocation3], %s135_s23 }
  0x10   : > { %s137_s26 = scalar_lea.vmem (!%p117_p9), [#allocation2], %s404_s24 }
  0x11   : > { %s341_s27 = sshll.u32 (!%p117_p9), %s137_s26, 4  ;;  %s342_s27 = int_to_ptr.vmem [resolvable:$true] %s341_s27 }
  0x12   : > { %s518_s4 = scalar_lea.vmem (!%p117_p9), %s342_s27, 32 }
  0x13   : > { %v159_v0 = vld [vmem:[%s731_s1 + $0x38] sm:$0xff]  ;;  %v158_v1 = vld [vmem:[%s731_s1 + $0x30] sm:$0xff]  ;;  %v157_v2 = vld [vmem:[%s731_s1 + $0x28] sm:$0xff]  ;;  %s740_s25 = smov (!%p139_p10, %s405_s25), 15  ;;  %vm160_vm0 = vcmask 523264   ;;  %vm324_vm1 = vcmask 1040384   ;;  %p519_p11 = scmp.ne.s32.totalorder %s342_s27, %s518_s4 }
  0x14   : > { %435 = vmatprep.subr.mxu0 %v159_v0  ;;  %463 = vmatprep.subr.mxu1 %v159_v0  ;;  %v156_v3 = vld [vmem:[%s731_s1 + $0x20] sm:$0xff]  ;;  %s406_s30 = sshll.u32 %s740_s25, 3  ;;  %v155_v4 = vld [vmem:[%s731_s1 + $0x18] sm:$0xff]  ;;  %v154_v5 = vld [vmem:[%s731_s1 + $0x10] sm:$0xff]  ;;  %s416_s25 = sshll.u32 %s617_s13, 5 }
  0x15   : > { %436 = vmatpush3.msra.mxu0 %v159_v0  ;;  %471 = vmatpush3.msra.mxu1 %v159_v0  ;;  %s663_s7 = scalar_lea.vmem %s730_s0, %s406_s30  ;;  %v153_v7 = vld [vmem:[%s731_s1 + $0x8] sm:$0xff]  ;;  %v152_v8 = vld [vmem:[%s731_s1] sm:$0xff]  ;;  %s695_s30 = scalar_lea.hbm %s732_s2, %s416_s25 }
  0x16   : > { %437 = vmatprep.subr.mxu0 %v158_v1  ;;  %464 = vmatprep.subr.mxu1 %v158_v1  ;;  %v144_v6 = vld [vmem:[%s663_s7] sm:$0xff]  ;;  %v145_v9 = vld [vmem:[%s663_s7 + $0x8] sm:$0xff]  ;;  %v146_v10 = vld [vmem:[%s663_s7 + $0x10] sm:$0xff]  ;;  %p520_p12 = pnand %p519_p11, %p634_p5  ;;  %s580_s13 = smov [#allocation2]  }
  0x17   : > { %438 = vmatpush3.msra.mxu0 %v158_v1  ;;  %472 = vmatpush3.msra.mxu1 %v158_v1  ;;  %v148_v11 = vld [vmem:[%s663_s7 + $0x20] sm:$0xff]  ;;  %v149_v12 = vld [vmem:[%s663_s7 + $0x28] sm:$0xff]  ;;  %v150_v13 = vld [vmem:[%s663_s7 + $0x30] sm:$0xff]  ;;  %s522_s5 = sshll.u32 %s580_s13, 4  ;;  %s523_s5 = int_to_ptr.vmem [resolvable:$false] %s522_s5 }
  0x18   : > { %439 = vmatprep.subr.mxu0 %v157_v2  ;;  %465 = vmatprep.subr.mxu1 %v157_v2  ;;  %v147_v14 = vld [vmem:[%s663_s7 + $0x18] sm:$0xff]  ;;  %p521_p13 = pneg %p520_p12  ;;  %s524_s6 = scalar_lea.vmem %s523_s5, 64 }
  0x19   : > { %440 = vmatpush3.msra.mxu0 %v157_v2  ;;  %473 = vmatpush3.msra.mxu1 %v157_v2  ;;  %v151_v15 = vld [vmem:[%s663_s7 + $0x38] sm:$0xff]  ;;  %p525_p0 = scmp.lt.s32.totalorder %s342_s27, %s523_s5  ;;  %p526_p1 = scmp.lt.s32.totalorder %s524_s6, %s518_s4 }
  0x1a   : > { %441 = vmatprep.subr.mxu0 %v156_v3  ;;  %466 = vmatprep.subr.mxu1 %v156_v3 }
  0x1b   : > { %442 = vmatpush3.msra.mxu0 %v156_v3  ;;  %474 = vmatpush3.msra.mxu1 %v156_v3  ;;  %p527_p2 = por %p526_p1, %p525_p0 }
  0x1c   : > { %443 = vmatprep.subr.mxu0 %v155_v4  ;;  %467 = vmatprep.subr.mxu1 %v155_v4 }
  0x1d   : > { %444 = vmatpush3.msra.mxu0 %v155_v4  ;;  %475 = vmatpush3.msra.mxu1 %v155_v4  ;;  %p528_p3 = pnand %p527_p2, %p521_p13 }
  0x1e   : > { %445 = vmatprep.subr.mxu0 %v154_v5  ;;  %451 = vmatprep.mubr.msk.f32.mxu0 %vm160_vm0, %v144_v6 }
  0x1f   : > { %446 = vmatpush3.msra.mxu0 %v154_v5  ;;  %468 = vmatprep.subr.mxu1 %v154_v5 }
  0x20   : > { %447 = vmatprep.subr.mxu0 %v153_v7  ;;  %476 = vmatpush3.msra.mxu1 %v154_v5 }
  0x21   : > { %448 = vmatpush3.msra.mxu0 %v153_v7  ;;  %469 = vmatprep.subr.mxu1 %v153_v7 }
  0x22   : > { %449 = vmatprep.subr.mxu0 %v152_v8  ;;  %477 = vmatpush3.msra.mxu1 %v153_v7 }
  0x23   : > { %450 = vmatpush3.msra.mxu0 %v152_v8  ;;  %470 = vmatprep.subr.mxu1 %v152_v8 }
  0x24   : > { %452 = vmatmul.mubr.msk.f32.vlgmr.msra.gmra.mxu0 %vm160_vm0, %v145_v9  ;;  %478 = vmatpush3.msra.mxu1 %v152_v8 }
  0x25   : > { %454 = vmatprep.mubr.msk.f32.mxu0 %vm160_vm0, %v146_v10  ;;  %457 = vmatprep.mubr.msk.f32.mxu1 %vm160_vm0, %v148_v11 }
  0x26   : > { %458 = vmatmul.mubr.msk.f32.vlgmr.msra.gmra.mxu1 %vm160_vm0, %v149_v12 }
  0x27   : > { %460 = vmatprep.mubr.msk.f32.mxu1 %vm160_vm0, %v150_v13 }
  0x28   : > { %455 = vmatmul.mubr.msk.f32.gmra.mxu0 %vm160_vm0, %v147_v14 }
  0x2a   : > { %461 = vmatmul.mubr.msk.f32.gmra.mxu1 %vm160_vm0, %v151_v15 }
  0xe4   : > { %v453_v16 = vpop.f32.mrf.mxu0 }
  0xe5   : > { %v304_v22 = vmul.f32 %v453_v16, %v453_v16 }
  0xe6   : > { %v251_v17 = vpop.f32.mrf.mxu0  ;;  %v459_v18 = vpop.f32.mrf.mxu1 }
  0xe7   : > { %v303_v19 = vmul.f32 %v251_v17, %v251_v17  ;;  %v290_v23 = vadd.f32 %v453_v16, %v251_v17  ;;  %v308_v36 = vmul.f32 %v459_v18, %v459_v18 }
  0xe8   : > { %v456_v20 = vpop.f32.mrf.mxu0  ;;  %v271_v21 = vpop.f32.mrf.mxu1 }
  0xe9   : > { %v311_v25 = vadd.f32 %v304_v22, %v303_v19  ;;  %v306_v29 = vmul.f32 %v456_v20, %v456_v20  ;;  %v307_v34 = vmul.f32 %v271_v21, %v271_v21 }
  0xea   : > { %v261_v24 = vpop.f32.mrf.mxu0  ;;  %v462_v28 = vpop.f32.mrf.mxu1 }
  0xeb   : > { %v291_v26 = vadd.f32 %v290_v23, %v261_v24  ;;  %v305_v27 = vmul.f32 %v261_v24, %v261_v24  ;;  %v310_v42 = vmul.f32 %v462_v28, %v462_v28 }
  0xec   : > { %v281_v35 = vpop.f32.mrf.mxu1 }
  0xed   : > { %v292_v30 = vadd.f32 %v456_v20, %v291_v26  ;;  %v312_v31 = vadd.f32 %v311_v25, %v305_v27  ;;  %v309_v40 = vmul.f32 %v281_v35, %v281_v35 }
  0xef   : > { %v313_v32 = vadd.f32 %v312_v31, %v306_v29  ;;  %v293_v33 = vadd.f32 %v292_v30, %v271_v21 }
  0xf1   : > { %v314_v37 = vadd.f32 %v313_v32, %v307_v34  ;;  %v294_v38 = vadd.f32 %v459_v18, %v293_v33 }
  0xf3   : > { %v295_v39 = vadd.f32 %v294_v38, %v281_v35  ;;  %v315_v41 = vadd.f32 %v314_v37, %v308_v36 }
  0xf5   : > { %v296_v43 = vadd.f32 %v462_v28, %v295_v39  ;;  %v316_v44 = vadd.f32 %v315_v41, %v309_v40 }
  0xf7   : > { %v297_v45 = vrot.slane %v296_v43, 4  ;;  %v317_v46 = vadd.f32 %v316_v44, %v310_v42 }
  0xf9   : > { %v298_v47 = vadd.f32 %v297_v45, %v296_v43  ;;  %v318_v48 = vrot.slane %v317_v46, 4 }
  0xfb   : > { %v299_v49 = vrot.slane %v298_v47, 2  ;;  %v319_v50 = vadd.f32 %v318_v48, %v317_v46 }
  0xfd   : > { %v300_v51 = vadd.f32 %v299_v49, %v298_v47  ;;  %v320_v52 = vrot.slane %v319_v50, 2 }
  0xff   : > { %v301_v53 = vrot.slane %v300_v51, 1  ;;  %v321_v54 = vadd.f32 %v320_v52, %v319_v50 }
 0x101   : > { %v322_v55 = vrot.slane %v321_v54, 1  ;;  %v302_v56 = vadd.f32 %v301_v53, %v300_v51 }
 0x103   : > { %v323_v57 = vadd.f32 %v322_v55, %v321_v54 }
 0x105   : > { %v325_v58 = vsel %vm324_vm1, %v302_v56, %v323_v57 }
 0x106   : > { %326 = vst [vmem:[%s137_s26] sm:$0x3] %v325_v58 }
 0x107   : > { %531 = shalt.err (!%p528_p3)
}
 0x108   : > { %s532_s7 = scalar_lea.hbm %s695_s30, 32  ;;  %s536_s16 = scalar_lea.hbm %s732_s2, 64 }
 0x109   : > { %p533_p4 = scmp.ne.s32.totalorder %s695_s30, %s532_s7  ;;  %p537_p9 = scmp.lt.s32.totalorder %s695_s30, %s732_s2 }
 0x10a   : > { %p538_p10 = scmp.lt.s32.totalorder %s536_s16, %s532_s7 }
 0x10b   : > { %p534_p7 = pnand %p533_p4, %p634_p5 }
 0x10c   : > { %p539_p11 = por %p538_p10, %p537_p9 }
 0x10d   : > { %p535_p8 = pneg %p534_p7 }
 0x10f   : > { %p540_p12 = pnand %p539_p11, %p535_p8 }
 0x111   : > { %543 = shalt.err (!%p540_p12)
}
 0x112   : > { %479 = dma.vmem_to_hbm [thread:$0]  (%p634_p5), %s342_s27, 32, %s695_s30, %s328_s3  }
 0x113 PF: > { %p485_p13 = scmp.ge.s32.totalorder %s578_s12, 2  ;;  %s353_s22 = sand.u32 1, %s566_s9  }
 0x114   : > { %s354_s23 = scalar_lea.sflag [#allocation3], %s353_s22 }
 0x115   : > { %p482_p0 = pnand %p485_p13, %p638_p6 }
 0x117   : > { %p483_p1 = pneg %p482_p0 }
 0x119   : > { %561 = dma.done.wait (%p483_p1), %s354_s23, 32  }
 0x11a   : > { %563 = vsyncadd (%p483_p1), %s354_s23, 4294967264  ;;  %p12_p2 = scmp.ge.s32.totalorder %s621_s15, 4   ;;  %s735_s9 = smov %s570_s10 }
 0x11b   : > { %s736_s10 = smov %s574_s11  ;;  %s737_s11 = smov %s632_s18 }
 0x11c   : > { %s738_s12 = smov %s621_s15  ;;  %14 = sbr.rel (!%p12_p2) target bundleno = 3 (0x3), region = 63 }
 0x121   :  { %359 = vsyncpa [#allocation3], 1 }
 0x122   :  { %361 = vsyncpa [#allocation3 + $0x1], 1 }

</bundles_post_ra>
